<compile_context>
chip_gen: v6e
topology: v6e:2x2x1
jax: 0.10.0
libtpu: 0.0.40
codegen_flags: <defaults>
</compile_context>

<pallas_src>
import functools

import jax
import jax.numpy as jnp
from jax import lax
from jax.experimental import pallas as pl
from jax.experimental.pallas import tpu as pltpu

_MIB = 1024 * 1024


def _round_up(x, m):
    return ((x + m - 1) // m) * m


def _cdiv(a, b):
    return (a + b - 1) // b


def _vmem_budget():
    """Returns (vmem_limit_bytes, per-tile target bytes) for this chip."""
    try:
        cap = int(getattr(pltpu.get_tpu_info(), "vmem_capacity_bytes",
                          64 * _MIB))
    except Exception:  # no TPU info available -> be conservative (v7x-sized)
        cap = 64 * _MIB
    # ~5/8 of physical VMEM, never above 48 MiB: leaves headroom for double
    # buffering + compiler-internal scratch on both 64 MiB and 128 MiB parts.
    vmem_limit = min((cap * 5) // 8, 48 * _MIB)
    # v7x (64 MiB VMEM, ~3.2 TB/s HBM): bigger tiles amortize per-step
    # overhead; 128 MiB parts are already >=85% of roofline at 4 MiB.
    target_tile = 8 * _MIB if cap <= 64 * _MIB else 4 * _MIB
    return vmem_limit, target_tile


def _pick_block_n(n_round, sub, block_rows):
    block_n = min(block_rows, n_round)
    # Guarantee >= 2 row blocks when the batch allows it so the "parallel"
    # batch axis can feed both TensorCores on v7x.
    if block_n >= n_round and n_round >= 2 * sub:
        block_n = _round_up(_cdiv(n_round, 2), sub)
    return max(sub, block_n)


# --------------------------------------------------------------------------
# Path A: row-tiled kernel (whole class dim resident per tile).
# --------------------------------------------------------------------------
def _am_rowtile_kernel(x_ref, lab_ref, out_ref, *, margin, scale, n_total,
                       block_n, use_const_max, needs_mask):
    x = x_ref[...].astype(jnp.float32)                      # (TB, C)
    tb, c = x.shape
    lab = lab_ref[...]                                      # (TB, 1) int32

    # Row L2 norm with torch-style clamp(min=1e-12); scale folded into the
    # per-row factor so the big tile only sees one broadcast multiply.
    sumsq = jnp.sum(x * x, axis=1, keepdims=True)           # (TB, 1)
    a = jnp.float32(scale) / jnp.maximum(jnp.sqrt(sumsq), jnp.float32(1e-12))

    class_ids = lax.broadcasted_iota(jnp.int32, (tb, c), 1)
    one_hot = class_ids == lab                              # (TB, C) bool

    if use_const_max:
        # Rows are L2-normalized -> z <= scale, so m = scale is a valid
        # logsumexp shift; fold it into the select constants: e_arg = z - m.
        e_arg = x * a - jnp.where(one_hot,
                                  jnp.float32((1.0 + margin) * scale),
                                  jnp.float32(scale))
        s = jnp.sum(jnp.exp(e_arg), axis=1, keepdims=True)
        t = jnp.sum(jnp.where(one_hot, e_arg, jnp.float32(0.0)),
                    axis=1, keepdims=True)                  # = z_label - m
        loss_i = jnp.log(s) - t
    else:
        z = x * a - jnp.where(one_hot, jnp.float32(margin * scale),
                              jnp.float32(0.0))
        m = jnp.max(z, axis=1, keepdims=True)
        s = jnp.sum(jnp.exp(z - m), axis=1, keepdims=True)
        t = jnp.sum(jnp.where(one_hot, z, jnp.float32(0.0)),
                    axis=1, keepdims=True)
        loss_i = m + jnp.log(s) - t

    if needs_mask:
        # True select BEFORE the block sum: overhanging rows may be garbage.
        rows = pl.program_id(0) * block_n + lax.broadcasted_iota(
            jnp.int32, (tb, 1), 0)
        loss_i = jnp.where(rows < n_total, loss_i, jnp.float32(0.0))

    out_ref[...] = jnp.broadcast_to(jnp.sum(loss_i),
                                    out_ref.shape).astype(jnp.float32)


# --------------------------------------------------------------------------
# Path B: class-tiled kernel (two sweeps over the class axis per row block).
# --------------------------------------------------------------------------
def _am_classtile_kernel(x_ref, lab_ref, out_ref, a_ref, m_ref, s_ref, t_ref,
                         *, margin, scale, n_total, n_classes, block_n,
                         block_c, grid_c, use_const_max, needs_mask,
                         needs_col_mask):
    i = pl.program_id(0)
    j = pl.program_id(1)                        # 0 .. 2*grid_c - 1
    x = x_ref[...].astype(jnp.float32)          # (TB, TC)
    tb, tc = x.shape

    # ---- phase 0 (j < grid_c): accumulate row sum of squares --------------
    @pl.when(j == 0)
    def _():
        a_ref[...] = jnp.zeros_like(a_ref)

    @pl.when(j < grid_c)
    def _():
        xsq = x * x
        if needs_col_mask:
            col = j * block_c + lax.broadcasted_iota(jnp.int32, (tb, tc), 1)
            xsq = jnp.where(col < n_classes, xsq, jnp.float32(0.0))
        a_ref[...] += jnp.sum(xsq, axis=1, keepdims=True)

    # ---- transition: sumsq -> scale/||x||, init online-LSE accumulators ---
    @pl.when(j == grid_c)
    def _():
        a_ref[...] = jnp.float32(scale) / jnp.maximum(
            jnp.sqrt(a_ref[...]), jnp.float32(1e-12))
        s_ref[...] = jnp.zeros_like(s_ref)
        t_ref[...] = jnp.zeros_like(t_ref)
        if not use_const_max:
            m_ref[...] = jnp.full_like(m_ref, -jnp.inf)

    # ---- phase 1 (j >= grid_c): online logsumexp over class tiles ---------
    @pl.when(j >= grid_c)
    def _():
        jc = j - grid_c
        a = a_ref[...]                          # (TB, 1) = scale / ||x||
        lab = lab_ref[...]                      # (TB, 1) int32
        class_ids = jc * block_c + lax.broadcasted_iota(jnp.int32, (tb, tc), 1)
        one_hot = class_ids == lab

        if use_const_max:
            e_arg = x * a - jnp.where(one_hot,
                                      jnp.float32((1.0 + margin) * scale),
                                      jnp.float32(scale))      # = z - scale
            if needs_col_mask:
                e_arg = jnp.where(class_ids < n_classes, e_arg,
                                  jnp.float32(-jnp.inf))
            s_ref[...] += jnp.sum(jnp.exp(e_arg), axis=1, keepdims=True)
            t_ref[...] += jnp.sum(jnp.where(one_hot, e_arg, jnp.float32(0.0)),
                                  axis=1, keepdims=True)
        else:
            z = x * a - jnp.where(one_hot, jnp.float32(margin * scale),
                                  jnp.float32(0.0))
            if needs_col_mask:
                z = jnp.where(class_ids < n_classes, z, jnp.float32(-jnp.inf))
            m_new = jnp.maximum(m_ref[...], jnp.max(z, axis=1, keepdims=True))
            alpha = jnp.exp(m_ref[...] - m_new)
            s_ref[...] = alpha * s_ref[...] + jnp.sum(
                jnp.exp(z - m_new), axis=1, keepdims=True)
            t_ref[...] += jnp.sum(jnp.where(one_hot, z, jnp.float32(0.0)),
                                  axis=1, keepdims=True)
            m_ref[...] = m_new

    # ---- finalize ----------------------------------------------------------
    @pl.when(j == 2 * grid_c - 1)
    def _():
        if use_const_max:
            loss_i = jnp.log(s_ref[...]) - t_ref[...]
        else:
            loss_i = m_ref[...] + jnp.log(s_ref[...]) - t_ref[...]
        if needs_mask:
            rows = i * block_n + lax.broadcasted_iota(jnp.int32, (tb, 1), 0)
            loss_i = jnp.where(rows < n_total, loss_i, jnp.float32(0.0))
        out_ref[...] = jnp.broadcast_to(jnp.sum(loss_i),
                                        out_ref.shape).astype(jnp.float32)


# --------------------------------------------------------------------------
# Wrapper.
# --------------------------------------------------------------------------
def additive_margin_softmax_loss(logits, labels, margin=0.35, scale=30.0,
                                 block_rows=None, block_cols=None):
    """AM-Softmax loss.  logits: (N, C) float (f32/bf16), labels: (N,) int.
    Returns a scalar float32 loss (mean over the batch)."""
    n, c = logits.shape
    assert n >= 1 and c >= 1
    margin = float(margin)
    scale = float(scale)

    itemsize = jnp.dtype(logits.dtype).itemsize
    sub = 8 if itemsize >= 4 else 16            # sublane multiple (f32 / bf16)

    vmem_limit, target_tile = _vmem_budget()
    tile_budget = (vmem_limit * 3) // 4          # headroom for labels/scratch

    # Constant-max logsumexp (shift m = scale folded into the select
    # constants) is safe only when exp(-(2+|margin|)*scale) stays comfortably
    # above f32 min-normal.
    use_const_max = (2.0 + abs(margin)) * scale <= 80.0

    labels = labels.reshape(-1).astype(jnp.int32)
    n_round = _round_up(n, sub)
    row_bytes = c * itemsize

    use_row_path = (block_cols is None
                    and 2 * sub * row_bytes <= tile_budget)

    if use_row_path:
        # --------------- Path A: row tiles over the whole class dim --------
        if block_rows is None:
            block_rows = target_tile // max(row_bytes, 1)
        block_rows = min(block_rows, tile_budget // (2 * max(row_bytes, 1)))
        block_rows = max(sub, min(4096, (block_rows // sub) * sub))
        block_n = _pick_block_n(n_round, sub, block_rows)
        grid_n = _cdiv(n, block_n)
        n_pad = grid_n * block_n
        needs_mask = n_pad != n

        x = logits
        if block_n > n:
            # Tiny batch: a single zero-padded block is simpler (and cheap).
            x = jnp.pad(x, ((0, block_n - n), (0, 0)))
        lab2 = jnp.pad(labels, (0, n_pad - n)).reshape(n_pad, 1)

        kernel = functools.partial(
            _am_rowtile_kernel, margin=margin, scale=scale, n_total=n,
            block_n=block_n, use_const_max=use_const_max,
            needs_mask=needs_mask)

        partials = pl.pallas_call(
            kernel,
            out_shape=jax.ShapeDtypeStruct((grid_n, 8, 128), jnp.float32),
            grid_spec=pltpu.PrefetchScalarGridSpec(
                num_scalar_prefetch=0,
                grid=(grid_n,),
                in_specs=[
                    # Logits: one large row tile per grid step.
                    pl.BlockSpec((block_n, c), lambda i: (i, 0)),
                    # Labels: small per-block tile (DMA hides under logits).
                    pl.BlockSpec((block_n, 1), lambda i: (i, 0)),
                ],
                out_specs=pl.BlockSpec((1, 8, 128), lambda i: (i, 0, 0)),
            ),
            compiler_params=pltpu.CompilerParams(
                dimension_semantics=("parallel",),
                vmem_limit_bytes=vmem_limit,
            ),
        )(x, lab2)
    else:
        # --------------- Path B: class-tiled, two-phase sweep ---------------
        if block_rows is None:
            block_rows = 256
        block_rows = max(sub, (block_rows // sub) * sub)
        block_n = _pick_block_n(n_round, sub, block_rows)
        grid_n = _cdiv(n, block_n)
        n_pad = grid_n * block_n
        needs_mask = n_pad != n

        if block_cols is None:
            block_cols = target_tile // max(block_n * itemsize, 1)
        max_cols = tile_budget // (2 * block_n * itemsize)
        block_c = max(128, min((block_cols // 128) * 128,
                               (max_cols // 128) * 128))
        if block_c >= c:
            block_c = c                     # whole class dim in one tile
        grid_c = _cdiv(c, block_c)
        needs_col_mask = grid_c * block_c != c

        x = logits
        if block_n > n:
            x = jnp.pad(x, ((0, block_n - n), (0, 0)))
        lab2 = jnp.pad(labels, (0, n_pad - n)).reshape(n_pad, 1)

        kernel = functools.partial(
            _am_classtile_kernel, margin=margin, scale=scale, n_total=n,
            n_classes=c, block_n=block_n, block_c=block_c, grid_c=grid_c,
            use_const_max=use_const_max, needs_mask=needs_mask,
            needs_col_mask=needs_col_mask)

        partials = pl.pallas_call(
            kernel,
            out_shape=jax.ShapeDtypeStruct((grid_n, 8, 128), jnp.float32),
            grid_spec=pltpu.PrefetchScalarGridSpec(
                num_scalar_prefetch=0,
                grid=(grid_n, 2 * grid_c),
                in_specs=[
                    # Logits: the class blocks are swept twice per row block
                    # (phase 0 = norm, phase 1 = online logsumexp).
                    pl.BlockSpec((block_n, block_c),
                                 lambda i, j: (i, j % grid_c)),
                    # Labels: one small tile per row block, resident over j.
                    pl.BlockSpec((block_n, 1), lambda i, j: (i, 0)),
                ],
                out_specs=pl.BlockSpec((1, 8, 128), lambda i, j: (i, 0, 0)),
                scratch_shapes=[
                    pltpu.VMEM((block_n, 1), jnp.float32),  # sumsq -> scale/norm
                    pltpu.VMEM((block_n, 1), jnp.float32),  # running max
                    pltpu.VMEM((block_n, 1), jnp.float32),  # running sum-exp
                    pltpu.VMEM((block_n, 1), jnp.float32),  # target logit
                ],
            ),
            compiler_params=pltpu.CompilerParams(
                dimension_semantics=("parallel", "arbitrary"),
                vmem_limit_bytes=vmem_limit,
            ),
        )(x, lab2)

    # Final mean: tiny pairwise reduction outside the kernel.
    return jnp.sum(partials[:, 0, 0]) / jnp.float32(n)


def _reference_loss(logits, labels, margin=0.35, scale=30.0):
    eps = 1e-12
    norm = jnp.maximum(jnp.linalg.norm(logits, axis=1, keepdims=True), eps)
    z = logits / norm
    one_hot = jax.nn.one_hot(labels, logits.shape[1], dtype=logits.dtype)
    z = (z - one_hot * margin) * scale
    logp = jax.nn.log_softmax(z, axis=1)
    return -jnp.mean(jnp.sum(one_hot * logp, axis=1))


# TODO(synk): the torch module's host-side "Warning: NaN or Inf in logits"
# print has no clean Pallas equivalent and is intentionally omitted.

if __name__ == "__main__":
    key = jax.random.PRNGKey(0)
    k1, k2, k3, k4, k5, k6 = jax.random.split(key, 6)

    # 1) Row-tiled path, evenly divisible batch (now split into 2 row blocks).
    N, C = 16, 32
    logits = jax.random.normal(k1, (N, C), dtype=jnp.float32)
    labels = jax.random.randint(k2, (N,), 0, C, dtype=jnp.int32)
    loss = jax.block_until_ready(additive_margin_softmax_loss(logits, labels))
    ref = _reference_loss(logits, labels)
    assert jnp.allclose(loss, ref, atol=1e-4, rtol=1e-4), (loss, ref)

    # 2) Row-tiled, batch not a multiple of 8 (overhanging tail block + mask).
    N2 = 20
    logits2 = jax.random.normal(k3, (N2, C), dtype=jnp.float32)
    labels2 = jax.random.randint(k4, (N2,), 0, C, dtype=jnp.int32)
    loss2 = jax.block_until_ready(additive_margin_softmax_loss(logits2, labels2))
    ref2 = _reference_loss(logits2, labels2)
    assert jnp.allclose(loss2, ref2, atol=1e-4, rtol=1e-4), (loss2, ref2)

    # 3) Row-tiled, multi-block grid with an overhanging last block.
    N3 = 40
    logits3 = jax.random.normal(k1, (N3, C), dtype=jnp.float32)
    labels3 = jax.random.randint(k2, (N3,), 0, C, dtype=jnp.int32)
    loss3 = jax.block_until_ready(
        additive_margin_softmax_loss(logits3, labels3, block_rows=16))
    ref3 = _reference_loss(logits3, labels3)
    assert jnp.allclose(loss3, ref3, atol=1e-4, rtol=1e-4), (loss3, ref3)

    # 4) bf16 logits (kernel upcasts per tile; rows rounded to 16).
    N4, C4 = 32, 64
    logits4 = jax.random.normal(k5, (N4, C4), dtype=jnp.float32)
    labels4 = jax.random.randint(k6, (N4,), 0, C4, dtype=jnp.int32)
    logits4_bf16 = logits4.astype(jnp.bfloat16)
    loss4 = jax.block_until_ready(
        additive_margin_softmax_loss(logits4_bf16, labels4))
    ref4 = _reference_loss(logits4_bf16.astype(jnp.float32), labels4)
    assert jnp.allclose(loss4, ref4, atol=1e-4, rtol=1e-4), (loss4, ref4)

    # 5) Class-tiled path (forced): C swept in 128-wide tiles, two phases.
    N5, C5 = 24, 384
    logits5 = jax.random.normal(k3, (N5, C5), dtype=jnp.float32)
    labels5 = jax.random.randint(k4, (N5,), 0, C5, dtype=jnp.int32)
    loss5 = jax.block_until_ready(
        additive_margin_softmax_loss(logits5, labels5,
                                     block_rows=8, block_cols=128))
    ref5 = _reference_loss(logits5, labels5)
    assert jnp.allclose(loss5, ref5, atol=1e-4, rtol=1e-4), (loss5, ref5)

    # 6) Class-tiled with both row and column tails (in-kernel masking).
    N6, C6 = 20, 200
    logits6 = jax.random.normal(k5, (N6, C6), dtype=jnp.float32)
    labels6 = jax.random.randint(k6, (N6,), 0, C6, dtype=jnp.int32)
    loss6 = jax.block_until_ready(
        additive_margin_softmax_loss(logits6, labels6, block_cols=128))
    ref6 = _reference_loss(logits6, labels6)
    assert jnp.allclose(loss6, ref6, atol=1e-4, rtol=1e-4), (loss6, ref6)

    print("KERNEL_OK")
</pallas_src>

<mosaic_0001>
module attributes {stable_mosaic.version = 11 : i64} {
  func.func @_am_rowtile_kernel(%arg0: i32, %arg1: memref<8x32xf32, #tpu.memory_space<vmem>>, %arg2: memref<8x1xi32, #tpu.memory_space<vmem>>, %arg3: memref<1x8x128xf32, #tpu.memory_space<vmem>>) attributes {dimension_semantics = [#tpu.dimension_semantics<parallel>], iteration_bounds = array<i64: 2>, scalar_prefetch = 0 : i64, scratch_operands = 0 : i64, tpu.core_type = #tpu.core_type<tc>, window_params = [{transform_indices = @transform_0, window_bounds = array<i64: 8, 32>}, {transform_indices = @transform_1, window_bounds = array<i64: 8, 1>}, {transform_indices = @transform_2, window_bounds = array<i64: 1, 8, 128>}]} {
    %c0 = arith.constant 0 : index
    %c0_0 = arith.constant 0 : index
    %0 = vector.load %arg1[%c0, %c0_0] : memref<8x32xf32, #tpu.memory_space<vmem>>, vector<8x32xf32>
    %c0_1 = arith.constant 0 : index
    %c0_2 = arith.constant 0 : index
    %1 = vector.load %arg2[%c0_1, %c0_2] : memref<8x1xi32, #tpu.memory_space<vmem>>, vector<8x1xi32>
    %2 = arith.mulf %0, %0 : vector<8x32xf32>
    %cst = arith.constant dense<0.000000e+00> : vector<8xf32>
    %3 = vector.multi_reduction <add>, %2, %cst [1] : vector<8x32xf32> to vector<8xf32>
    %4 = vector.shape_cast %3 : vector<8xf32> to vector<8x1xf32>
    %5 = math.sqrt %4 : vector<8x1xf32>
    %cst_3 = arith.constant 9.99999996E-13 : f32
    %6 = vector.broadcast %cst_3 : f32 to vector<8x1xf32>
    %7 = arith.maximumf %5, %6 : vector<8x1xf32>
    %cst_4 = arith.constant 3.000000e+01 : f32
    %8 = vector.broadcast %cst_4 : f32 to vector<8x1xf32>
    %9 = arith.divf %8, %7 : vector<8x1xf32>
    %10 = tpu.iota {dimensions = array<i32: 1>} : vector<8x32xi32>
    %11 = vector.broadcast %1 : vector<8x1xi32> to vector<8x32xi32>
    %12 = arith.cmpi eq, %10, %11 : vector<8x32xi32>
    %13 = vector.broadcast %9 : vector<8x1xf32> to vector<8x32xf32>
    %14 = arith.mulf %0, %13 : vector<8x32xf32>
    %cst_5 = arith.constant 4.050000e+01 : f32
    %cst_6 = arith.constant 3.000000e+01 : f32
    %15 = vector.broadcast %cst_5 : f32 to vector<8x32xf32>
    %16 = vector.broadcast %cst_6 : f32 to vector<8x32xf32>
    %17 = arith.select %12, %15, %16 : vector<8x32xi1>, vector<8x32xf32>
    %18 = arith.subf %14, %17 : vector<8x32xf32>
    %19 = math.exp %18 : vector<8x32xf32>
    %cst_7 = arith.constant dense<0.000000e+00> : vector<8xf32>
    %20 = vector.multi_reduction <add>, %19, %cst_7 [1] : vector<8x32xf32> to vector<8xf32>
    %21 = vector.shape_cast %20 : vector<8xf32> to vector<8x1xf32>
    %cst_8 = arith.constant 0.000000e+00 : f32
    %22 = vector.broadcast %cst_8 : f32 to vector<8x32xf32>
    %23 = arith.select %12, %18, %22 : vector<8x32xi1>, vector<8x32xf32>
    %cst_9 = arith.constant dense<0.000000e+00> : vector<8xf32>
    %24 = vector.multi_reduction <add>, %23, %cst_9 [1] : vector<8x32xf32> to vector<8xf32>
    %25 = vector.shape_cast %24 : vector<8xf32> to vector<8x1xf32>
    %26 = math.log %21 : vector<8x1xf32>
    %27 = arith.subf %26, %25 : vector<8x1xf32>
    %28 = vector.shape_cast %27 : vector<8x1xf32> to vector<1x8x1xf32>
    %cst_10 = arith.constant dense<0.000000e+00> : vector<1xf32>
    %29 = vector.multi_reduction <add>, %28, %cst_10 [1, 2] : vector<1x8x1xf32> to vector<1xf32>
    %30 = vector.shape_cast %29 : vector<1xf32> to vector<1x1x1xf32>
    %31 = vector.extract %30[0, 0, 0] : f32 from vector<1x1x1xf32>
    %32 = vector.broadcast %31 : f32 to vector<1x8x128xf32>
    %c0_11 = arith.constant 0 : index
    %c0_12 = arith.constant 0 : index
    %c0_13 = arith.constant 0 : index
    %33 = vector.load %arg3[%c0_11, %c0_12, %c0_13] : memref<1x8x128xf32, #tpu.memory_space<vmem>>, vector<1x8x128xf32>
    tpu.vector_store %arg3[%c0_11, %c0_12, %c0_13], %32 {strides = array<i32>} : memref<1x8x128xf32, #tpu.memory_space<vmem>>, vector<1x8x128xf32>,
    return
  }
  func.func @transform_0(%arg0: i32) -> (i32, i32) {
    %c0_i32 = arith.constant 0 : i32
    %c0_i32_0 = arith.constant 0 : i32
    return %arg0, %c0_i32 : i32, i32
  }
  func.func @transform_1(%arg0: i32) -> (i32, i32) {
    %c0_i32 = arith.constant 0 : i32
    %c0_i32_0 = arith.constant 0 : i32
    return %arg0, %c0_i32 : i32, i32
  }
  func.func @transform_2(%arg0: i32) -> (i32, i32, i32) {
    %c0_i32 = arith.constant 0 : i32
    %c0_i32_0 = arith.constant 0 : i32
    %c0_i32_1 = arith.constant 0 : i32
    return %arg0, %c0_i32, %c0_i32_0 : i32, i32, i32
  }
}

</mosaic_0001>

<bundles_post_ra>
// kernel: tpu_custom_call.1
= control target key start
LH: loop header
LB: loop body
LE: loop exit
PB: predicated region body
PF: predicated region fallthrough
CT: control target
= control target key end

     0   :  { %7 = vsyncpa [#allocation3], 0  ;;  %s534_s0 = inlined_call_operand.vmem [shape: f32[16,32], index: 0, kind: input, shape index: {}]   ;;  %s535_s1 = inlined_call_operand.vmem [shape: s32[16,1], index: 1, kind: input, shape index: {}]   ;;  %s536_s2 = inlined_call_operand.hbm [shape: f32[2,8,128], index: 2, kind: output, shape index: {}]  }
   0x1   :  { %9 = vsyncpa [#allocation3 + $0x1], 0  ;;  %s435_s9 = smov 0   ;;  %s437_s10 = smov 0  }
   0x2   :  { %s439_s11 = smov 0   ;;  %s441_s12 = smov 0  }
   0x3 LB: > { %s456_s13 = sadd.s32 4294967295, %s415_s12   ;;  %s292_s14 = sadd.s32 4294967294, %s415_s12   ;;  %s415_s12 = sphi %s441_s12, %s542_s12   ;;  %s411_s11 = sphi %s439_s11, %s541_s11   ;;  %s407_s10 = sphi %s437_s10, %s540_s10   ;;  %s403_s9 = sphi %s435_s9, %s539_s9  }
   0x4   : > { %s460_s15 = sadd.s32 1, %s415_s12   ;;  %s74_s16 = sadd.s32 1, %s411_s11 }
   0x5   : > { %s71_s17 = ssub.s32 %s415_s12, %s460_s15  ;;  %p84_p0 = scmp.ne.s32.totalorder %s411_s11, %s407_s10 }
   0x6   : > { %p72_p1 = scmp.eq.s32.totalorder %s71_s17, 0  ;;  %p85_p2 = scmp.eq.s32.totalorder %s456_s13, 1 }
   0x7   : > { %p90_p3 = scmp.ne.s32.totalorder %s407_s10, %s403_s9  ;;  %p91_p4 = scmp.eq.s32.totalorder %s292_s14, 1 }
   0x8   : > { %s471_s18 = scalar_select %p72_p1, %s411_s11, %s74_s16  }
   0x9   : > { %p473_p5 = por %p85_p2, %p84_p0  ;;  %p477_p6 = por %p91_p4, %p90_p3 }
   0xa   : > { %p295_p7 = scmp.ge.s32.totalorder %s415_s12, 1  ;;  %p123_p8 = scmp.lt.s32.totalorder %s415_s12, 3 }
   0xc   : > { %p124_p9 = pnand %p295_p7, %p123_p8 }
   0xd   : > { %p148_p10 = scmp.lt.s32.totalorder (!%p124_p9), %s456_s13, 1  ;;  %s145_s29 = sand.u32 (!%p124_p9), 1, %s407_s10  }
   0xe   : > { %127 = sbr.rel (%p124_p9) target bundleno = 593 (0x251), region = 28  ;;  %s296_s30 = sshll.u32 (!%p124_p9), %s145_s29, 3 }
   0xf   : > { %s147_s3 = scalar_lea.vmem (!%p124_p9), [#allocation2], %s296_s30  ;;  %s300_s5 = sshll.u32 (!%p124_p9), %s456_s13, 7 }
  0x10   : > { %s221_s4 = sshll.u32 (!%p124_p9), %s147_s3, 4  ;;  %s219_s14 = scalar_lea.hbm (!%p124_p9), %s536_s2, %s300_s5  ;;  %s496_s4 = int_to_ptr.vmem [resolvable:$true] %s221_s4 }
  0x11   : > { %s208_s16 = scalar_lea.sflag (!%p124_p9), [#allocation3], %s145_s29  ;;  %s355_s17 = scalar_lea.vmem (!%p124_p9), %s496_s4, 128 }
  0x12   : > { %p356_p11 = scmp.ne.s32.totalorder (!%p124_p9), %s496_s4, %s355_s17 }
  0x13   : > { %v417_v0 = vmov 0   ;;  %s149_s21 = scalar_select %p148_p10, %s456_s13, 1  ;;  %vm159_vm0 = vcmask 261120   ;;  %v173_v12 = vlaneseq  ;;  %v418_v17 = vmov 30.0  }
  0x14   : > { %346 = vset.pattern.permute.xlu0 %v417_v0  ;;  %vm194_vm4 = vcmask 7168   ;;  %p357_p12 = pnand %p356_p11, %p473_p5 }
  0x15   : > { %s297_s22 = sshll.u32 %s149_s21, 3  ;;  %v174_v13 = vand.u32 127, %v173_v12  ;;  %s419_s21 = smov [#allocation2]  }
  0x16   : > { %s151_s25 = scalar_lea.vmem %s534_s0, %s297_s22  ;;  %s155_s28 = scalar_lea.vmem %s535_s1, %s297_s22 }
  0x17   : > { %v156_v1 = vld [vmem:[%s151_s25] sm:$0xff]  ;;  %p358_p13 = pneg %p357_p12  ;;  %s359_s13 = sshll.u32 %s419_s21, 4  ;;  %s360_s13 = int_to_ptr.vmem [resolvable:$false] %s359_s13 }
  0x18   : > { %v158_v2 = vmul.f32 %v156_v1, %v156_v1  ;;  %v157_v4 = vld [vmem:[%s155_s28] sm:$0xff]  ;;  %s361_s22 = scalar_lea.vmem %s360_s13, 256  ;;  %p362_p0 = scmp.lt.s32.totalorder %s496_s4, %s360_s13 }
  0x19   : > { %p363_p1 = scmp.lt.s32.totalorder %s361_s22, %s355_s17 }
  0x1a   : > { %v160_v3 = vsel %vm159_vm0, %v158_v2, 0.0 }
  0x1b   : > { %161 = vadd.xlane.f32.xlu0 %v160_v3  ;;  %p364_p2 = por %p363_p1, %p362_p0 }
  0x1d   : > { %p365_p3 = pnand %p364_p2, %p358_p13 }
  0x31   : > { %176 = vperm.xlu0 %346, %v157_v4  }
  0xa4   : > { %v162_v5 = vpop.xlane.xlu0 %161 }
  0xa5   : > { %347 = vrsqrt.f32 %v162_v5  ;;  %vm165_vm1 = vcmp.eq.f32.partialorder %v162_v5, inf  ;;  %v168_v8 = vand.u32 2147483648, %v162_v5  ;;  %vm167_vm2 = vcmp.eq.f32.partialorder %v162_v5, 0.0 }
  0xac   : > { %v177_v14 = vpop.permute.xlu0 %176 }
  0xad   : > { %vm178_vm3 = vcmp.eq.s32.totalorder %v174_v13, %v177_v14 }
  0xae   : > { %v180_v18 = vsel %vm178_vm3, 40.5, %v418_v17 }
  0xb2   : > { %v348_v6 = vpop.eup %347 }
  0xb3   : > { %v164_v7 = vmul.f32 %v348_v6, %v162_v5 }
  0xb5   : > { %v166_v9 = vsel %vm165_vm1, %v162_v5, %v164_v7 }
  0xb6   : > { %v169_v10 = vsel %vm167_vm2, %v168_v8, %v166_v9 }
  0xb7   : > { %v170_v11 = vmax.f32 %v169_v10, 1e-12 }
  0xb9   : > { %349 = vrcp.f32 %v170_v11 }
  0xc6   : > { %v350_v15 = vpop.eup %349 }
  0xc7   : > { %v172_v16 = vmul.f32 30.0, %v350_v15 }
  0xc9   : > { %v179_v19 = vmul.f32 %v172_v16, %v156_v1 }
  0xcb   : > { %v181_v20 = vsub.f32 %v179_v19, %v180_v18 }
  0xcd   : > { %v182_v21 = vmul.f32 1.442695, %v181_v20  ;;  %v187_v24 = vsel %vm178_vm3, %v181_v20, 0.0 }
  0xce   : > { %v188_v25 = vsel %vm159_vm0, %v187_v24, 0.0 }
  0xcf   : > { %351 = vpow2.f32 %v182_v21 }
  0xdc   : > { %v352_v22 = vpop.eup %351 }
  0xdd   : > { %v184_v23 = vsel %vm159_vm0, %v352_v22, 0.0 }
  0xde   : > { %185 = vadd.xlane.f32.xlu1 %v184_v23 }
  0xe2   : > { %189 = vadd.xlane.f32.xlu1 %v188_v25 }
 0x167   : > { %v186_v26 = vpop.xlane.xlu1 %185 }
 0x168   : > { %353 = vlog2.f32 %v186_v26 }
 0x16b   : > { %v190_v29 = vpop.xlane.xlu1 %189 }
 0x175   : > { %v354_v27 = vpop.eup %353 }
 0x176   : > { %v192_v28 = vmul.f32 0.6931472, %v354_v27 }
 0x178   : > { %v193_v30 = vsub.f32 %v192_v28, %v190_v29 }
 0x17a   : > { %v195_v31 = vsel %vm194_vm4, %v193_v30, 0.0 }
 0x17b   : > { %196 = vadd.xlane.f32.xlu1 %v195_v31 }
 0x204   : > { %v197_v32 = vpop.xlane.xlu1 %196 }
 0x205   : > { %v198_v33 = vrot.slane %v197_v32, 4 }
 0x207   : > { %v199_v34 = vadd.f32 %v198_v33, %v197_v32 }
 0x209   : > { %v200_v35 = vrot.slane %v199_v34, 2 }
 0x20b   : > { %v201_v36 = vadd.f32 %v200_v35, %v199_v34 }
 0x20d   : > { %v202_v37 = vrot.slane %v201_v36, 1 }
 0x20f   : > { %v203_v38 = vadd.f32 %v202_v37, %v201_v36 }
 0x211   : > { %303 = vpush %v203_v38 }
 0x242   : > { %s304_s6 = spop %303 }
 0x243   : > { %v205_v39 = vstv %s304_s6 }
 0x244   : > { %206 = vst [vmem:[%s147_s3] sm:$0xff] %v205_v39 }
 0x245   : > { %368 = shalt.err (!%p365_p3)
}
 0x246   : > { %s369_s23 = scalar_lea.hbm %s219_s14, 128  ;;  %s373_s26 = scalar_lea.hbm %s536_s2, 256 }
 0x247   : > { %p370_p4 = scmp.ne.s32.totalorder %s219_s14, %s369_s23  ;;  %p374_p9 = scmp.lt.s32.totalorder %s219_s14, %s536_s2 }
 0x248   : > { %p375_p10 = scmp.lt.s32.totalorder %s373_s26, %s369_s23 }
 0x249   : > { %p371_p7 = pnand %p370_p4, %p473_p5 }
 0x24a   : > { %p376_p11 = por %p375_p10, %p374_p9 }
 0x24b   : > { %p372_p8 = pneg %p371_p7 }
 0x24d   : > { %p377_p12 = pnand %p376_p11, %p372_p8 }
 0x24f   : > { %380 = shalt.err (!%p377_p12)
}
 0x250   : > { %305 = dma.vmem_to_hbm [thread:$0]  (%p473_p5), %s496_s4, 128, %s219_s14, %s208_s16  }
 0x251 PF: > { %p311_p13 = scmp.ge.s32.totalorder %s415_s12, 2  ;;  %s233_s29 = sand.u32 1, %s403_s9  }
 0x252   : > { %s234_s30 = scalar_lea.sflag [#allocation3], %s233_s29 }
 0x253   : > { %p308_p0 = pnand %p311_p13, %p477_p6 }
 0x255   : > { %p309_p1 = pneg %p308_p0 }
 0x257   : > { %398 = dma.done.wait (%p309_p1), %s234_s30, 128  }
 0x258   : > { %400 = vsyncadd (%p309_p1), %s234_s30, 4294967168  ;;  %p12_p2 = scmp.ge.s32.totalorder %s460_s15, 4   ;;  %s539_s9 = smov %s407_s10 }
 0x259   : > { %s540_s10 = smov %s411_s11  ;;  %s541_s11 = smov %s471_s18 }
 0x25a   : > { %s542_s12 = smov %s460_s15  ;;  %14 = sbr.rel (!%p12_p2) target bundleno = 3 (0x3), region = 66 }
 0x25f   :  { %239 = vsyncpa [#allocation3], 1 }
 0x260   :  { %241 = vsyncpa [#allocation3 + $0x1], 1 }

</bundles_post_ra>
